<compile_context>
chip_gen: v7x
topology: tpu7x:2x2x1
jax: 0.10.0
libtpu: 0.0.40
codegen_flags: <defaults>
</compile_context>

<pallas_src>
import functools

import jax
import jax.numpy as jnp
from jax import lax
from jax.experimental import pallas as pl
from jax.experimental.pallas import tpu as pltpu


def _pixel_shuffle_kernel(x_ref, s_ref, p_ref, o_ref, *, r):
    # x_ref: (1, r*r, TH, W)    the r^2 input planes of one channel group / H-band
    # s_ref: (r, W, W*r)        width-interleave one-hots:  S[j][w, w*r + j] = 1
    # p_ref: (r, TH*r, TH)      height-interleave one-hots: P[i][h*r + i, h] = 1
    # o_ref: (1, 1, TH*r, W*r)  output band (lane-dense, full-row store)
    th = x_ref.shape[2]
    w = x_ref.shape[3]

    acc = jnp.zeros((th * r, w * r), jnp.float32)
    for i in range(r):                      # static unroll, r is small (e.g. 2)
        slab = jnp.zeros((th, w * r), jnp.float32)
        for j in range(r):
            slab = slab + jnp.dot(
                x_ref[0, i * r + j], s_ref[j],
                precision=lax.Precision.HIGHEST,
                preferred_element_type=jnp.float32)
        acc = acc + jnp.dot(
            p_ref[i], slab,
            precision=lax.Precision.HIGHEST,
            preferred_element_type=jnp.float32)

    o_ref[0, 0] = acc.astype(o_ref.dtype)


def _pick_h_band(h):
    # Largest multiple-of-8 divisor of H (<= 128): big blocks amortize the
    # ~0.35us per-step overhead while bounding per-step VMEM for large images.
    for th in (128, 64, 32, 16, 8):
        if h % th == 0:
            return th
    return h  # small / odd H: a single band covering the full height


def sub_pixel(x, scale):
    """PixelShuffle forward: x (N, C*r^2, H, W) -> (N, C, H*r, W*r)."""
    r = int(scale)
    n, crr, h, w = x.shape
    if crr % (r * r) != 0:
        raise ValueError("channel dim must be divisible by scale**2")
    c = crr // (r * r)
    th = _pick_h_band(h)
    n_bands = h // th

    # Tiny constant one-hot permutation matrices (built once per trace).
    #   S[j, w_in, k] = 1  iff  k == w_in * r + j          -> width interleave
    #   P[i, m, hh]   = 1  iff  m == hh * r + i            -> height interleave
    k = jnp.arange(w * r)
    s = (k[None, None, :] ==
         (jnp.arange(w)[None, :, None] * r + jnp.arange(r)[:, None, None])
         ).astype(jnp.float32)                                 # (r, W, W*r)
    m = jnp.arange(th * r)
    p = (m[None, :, None] ==
         (jnp.arange(th)[None, None, :] * r + jnp.arange(r)[:, None, None])
         ).astype(jnp.float32)                                 # (r, TH*r, TH)

    kernel = functools.partial(_pixel_shuffle_kernel, r=r)

    return pl.pallas_call(
        kernel,
        out_shape=jax.ShapeDtypeStruct((n, c, h * r, w * r), x.dtype),
        grid_spec=pltpu.PrefetchScalarGridSpec(
            num_scalar_prefetch=0,
            grid=(n, c, n_bands),
            in_specs=[
                pl.BlockSpec((1, r * r, th, w), lambda b, ci, t: (b, ci, t, 0)),
                pl.BlockSpec((r, w, w * r), lambda b, ci, t: (0, 0, 0)),
                pl.BlockSpec((r, th * r, th), lambda b, ci, t: (0, 0, 0)),
            ],
            out_specs=pl.BlockSpec((1, 1, th * r, w * r),
                                   lambda b, ci, t: (b, ci, t, 0)),
        ),
        compiler_params=pltpu.CompilerParams(
            dimension_semantics=("parallel", "parallel", "parallel")),
    )(x, s, p)


def _reference(x, r):
    # Pure-JAX PixelShuffle (matches torch.nn.PixelShuffle exactly).
    n, crr, h, w = x.shape
    c = crr // (r * r)
    y = x.reshape(n, c, r, r, h, w)
    y = jnp.transpose(y, (0, 1, 4, 2, 5, 3))
    return y.reshape(n, c, h * r, w * r)


if __name__ == "__main__":
    key = jax.random.PRNGKey(0)
    scale = 2
    n, c_out, h, w = 2, 1, 16, 16            # input channels = c_out*scale^2 = 4

    x = jax.random.normal(key, (n, c_out * scale * scale, h, w),
                          dtype=jnp.float32)
    # Snap values to a bf16-exact grid so the permutation check is exact under
    # any MXU precision mode (the kernel also requests Precision.HIGHEST).
    x = jnp.round(x * 32.0) / 32.0

    out = jax.block_until_ready(sub_pixel(x, scale))
    ref = jax.block_until_ready(_reference(x, scale))

    if out.shape != ref.shape:
        raise AssertionError(f"shape mismatch: {out.shape} vs {ref.shape}")
    if not jnp.allclose(out, ref, atol=1e-6, rtol=0.0):
        raise AssertionError("Pallas pixel-shuffle mismatch vs reference")

    print("KERNEL_OK")
</pallas_src>

<mosaic_0001>
module attributes {stable_mosaic.version = 11 : i64} {
  func.func @_pixel_shuffle_kernel(%arg0: i32, %arg1: i32, %arg2: i32, %arg3: memref<1x4x16x16xf32, #tpu.memory_space<vmem>>, %arg4: memref<2x16x32xf32, #tpu.memory_space<vmem>>, %arg5: memref<2x32x16xf32, #tpu.memory_space<vmem>>, %arg6: memref<1x1x32x32xf32, #tpu.memory_space<vmem>>) attributes {dimension_semantics = [#tpu.dimension_semantics<parallel>, #tpu.dimension_semantics<parallel>, #tpu.dimension_semantics<parallel>], iteration_bounds = array<i64: 2, 1, 1>, scalar_prefetch = 0 : i64, scratch_operands = 0 : i64, tpu.core_type = #tpu.core_type<tc>, window_params = [{transform_indices = @transform_0, window_bounds = array<i64: 1, 4, 16, 16>}, {pipeline_mode = #tpu.pipeline_mode<synchronous>, transform_indices = @transform_1, window_bounds = array<i64: 2, 16, 32>}, {pipeline_mode = #tpu.pipeline_mode<synchronous>, transform_indices = @transform_2, window_bounds = array<i64: 2, 32, 16>}, {transform_indices = @transform_3, window_bounds = array<i64: 1, 1, 32, 32>}]} {
    %cst = arith.constant 0.000000e+00 : f32
    %0 = vector.broadcast %cst : f32 to vector<32x32xf32>
    %cst_0 = arith.constant 0.000000e+00 : f32
    %1 = vector.broadcast %cst_0 : f32 to vector<16x32xf32>
    %c0 = arith.constant 0 : index
    %c0_1 = arith.constant 0 : index
    %c0_2 = arith.constant 0 : index
    %c0_3 = arith.constant 0 : index
    %2 = vector.load %arg3[%c0, %c0_1, %c0_2, %c0_3] : memref<1x4x16x16xf32, #tpu.memory_space<vmem>>, vector<1x1x16x16xf32>
    %3 = vector.shape_cast %2 : vector<1x1x16x16xf32> to vector<16x16xf32>
    %c0_4 = arith.constant 0 : index
    %c0_5 = arith.constant 0 : index
    %c0_6 = arith.constant 0 : index
    %4 = vector.load %arg4[%c0_4, %c0_5, %c0_6] : memref<2x16x32xf32, #tpu.memory_space<vmem>>, vector<1x16x32xf32>
    %5 = vector.shape_cast %4 : vector<1x16x32xf32> to vector<16x32xf32>
    %cst_7 = arith.constant dense<0.000000e+00> : vector<16x32xf32>
    %6 = tpu.matmul %3, %5, %cst_7 {dimension_numbers = #tpu.dot_dimension_numbers<[1], [0], [0], [1], [0, 0, 1, 1], [], []>, precision = #tpu.contract_precision<fp32>} : vector<16x16xf32>, vector<16x32xf32>, vector<16x32xf32> -> vector<16x32xf32>
    %7 = arith.addf %1, %6 : vector<16x32xf32>
    %c0_8 = arith.constant 0 : index
    %c1 = arith.constant 1 : index
    %c0_9 = arith.constant 0 : index
    %c0_10 = arith.constant 0 : index
    %8 = vector.load %arg3[%c0_8, %c1, %c0_9, %c0_10] : memref<1x4x16x16xf32, #tpu.memory_space<vmem>>, vector<1x1x16x16xf32>
    %9 = vector.shape_cast %8 : vector<1x1x16x16xf32> to vector<16x16xf32>
    %c1_11 = arith.constant 1 : index
    %c0_12 = arith.constant 0 : index
    %c0_13 = arith.constant 0 : index
    %10 = vector.load %arg4[%c1_11, %c0_12, %c0_13] : memref<2x16x32xf32, #tpu.memory_space<vmem>>, vector<1x16x32xf32>
    %11 = vector.shape_cast %10 : vector<1x16x32xf32> to vector<16x32xf32>
    %cst_14 = arith.constant dense<0.000000e+00> : vector<16x32xf32>
    %12 = tpu.matmul %9, %11, %cst_14 {dimension_numbers = #tpu.dot_dimension_numbers<[1], [0], [0], [1], [0, 0, 1, 1], [], []>, precision = #tpu.contract_precision<fp32>} : vector<16x16xf32>, vector<16x32xf32>, vector<16x32xf32> -> vector<16x32xf32>
    %13 = arith.addf %7, %12 : vector<16x32xf32>
    %c0_15 = arith.constant 0 : index
    %c0_16 = arith.constant 0 : index
    %c0_17 = arith.constant 0 : index
    %14 = vector.load %arg5[%c0_15, %c0_16, %c0_17] : memref<2x32x16xf32, #tpu.memory_space<vmem>>, vector<1x32x16xf32>
    %15 = vector.shape_cast %14 : vector<1x32x16xf32> to vector<32x16xf32>
    %cst_18 = arith.constant dense<0.000000e+00> : vector<32x32xf32>
    %16 = tpu.matmul %15, %13, %cst_18 {dimension_numbers = #tpu.dot_dimension_numbers<[1], [0], [0], [1], [0, 0, 1, 1], [], []>, precision = #tpu.contract_precision<fp32>} : vector<32x16xf32>, vector<16x32xf32>, vector<32x32xf32> -> vector<32x32xf32>
    %17 = arith.addf %0, %16 : vector<32x32xf32>
    %cst_19 = arith.constant 0.000000e+00 : f32
    %18 = vector.broadcast %cst_19 : f32 to vector<16x32xf32>
    %c0_20 = arith.constant 0 : index
    %c2 = arith.constant 2 : index
    %c0_21 = arith.constant 0 : index
    %c0_22 = arith.constant 0 : index
    %19 = vector.load %arg3[%c0_20, %c2, %c0_21, %c0_22] : memref<1x4x16x16xf32, #tpu.memory_space<vmem>>, vector<1x1x16x16xf32>
    %20 = vector.shape_cast %19 : vector<1x1x16x16xf32> to vector<16x16xf32>
    %c0_23 = arith.constant 0 : index
    %c0_24 = arith.constant 0 : index
    %c0_25 = arith.constant 0 : index
    %21 = vector.load %arg4[%c0_23, %c0_24, %c0_25] : memref<2x16x32xf32, #tpu.memory_space<vmem>>, vector<1x16x32xf32>
    %22 = vector.shape_cast %21 : vector<1x16x32xf32> to vector<16x32xf32>
    %cst_26 = arith.constant dense<0.000000e+00> : vector<16x32xf32>
    %23 = tpu.matmul %20, %22, %cst_26 {dimension_numbers = #tpu.dot_dimension_numbers<[1], [0], [0], [1], [0, 0, 1, 1], [], []>, precision = #tpu.contract_precision<fp32>} : vector<16x16xf32>, vector<16x32xf32>, vector<16x32xf32> -> vector<16x32xf32>
    %24 = arith.addf %18, %23 : vector<16x32xf32>
    %c0_27 = arith.constant 0 : index
    %c3 = arith.constant 3 : index
    %c0_28 = arith.constant 0 : index
    %c0_29 = arith.constant 0 : index
    %25 = vector.load %arg3[%c0_27, %c3, %c0_28, %c0_29] : memref<1x4x16x16xf32, #tpu.memory_space<vmem>>, vector<1x1x16x16xf32>
    %26 = vector.shape_cast %25 : vector<1x1x16x16xf32> to vector<16x16xf32>
    %c1_30 = arith.constant 1 : index
    %c0_31 = arith.constant 0 : index
    %c0_32 = arith.constant 0 : index
    %27 = vector.load %arg4[%c1_30, %c0_31, %c0_32] : memref<2x16x32xf32, #tpu.memory_space<vmem>>, vector<1x16x32xf32>
    %28 = vector.shape_cast %27 : vector<1x16x32xf32> to vector<16x32xf32>
    %cst_33 = arith.constant dense<0.000000e+00> : vector<16x32xf32>
    %29 = tpu.matmul %26, %28, %cst_33 {dimension_numbers = #tpu.dot_dimension_numbers<[1], [0], [0], [1], [0, 0, 1, 1], [], []>, precision = #tpu.contract_precision<fp32>} : vector<16x16xf32>, vector<16x32xf32>, vector<16x32xf32> -> vector<16x32xf32>
    %30 = arith.addf %24, %29 : vector<16x32xf32>
    %c1_34 = arith.constant 1 : index
    %c0_35 = arith.constant 0 : index
    %c0_36 = arith.constant 0 : index
    %31 = vector.load %arg5[%c1_34, %c0_35, %c0_36] : memref<2x32x16xf32, #tpu.memory_space<vmem>>, vector<1x32x16xf32>
    %32 = vector.shape_cast %31 : vector<1x32x16xf32> to vector<32x16xf32>
    %cst_37 = arith.constant dense<0.000000e+00> : vector<32x32xf32>
    %33 = tpu.matmul %32, %30, %cst_37 {dimension_numbers = #tpu.dot_dimension_numbers<[1], [0], [0], [1], [0, 0, 1, 1], [], []>, precision = #tpu.contract_precision<fp32>} : vector<32x16xf32>, vector<16x32xf32>, vector<32x32xf32> -> vector<32x32xf32>
    %34 = arith.addf %17, %33 : vector<32x32xf32>
    %c0_38 = arith.constant 0 : index
    %c0_39 = arith.constant 0 : index
    %c0_40 = arith.constant 0 : index
    %c0_41 = arith.constant 0 : index
    %35 = vector.load %arg6[%c0_38, %c0_39, %c0_40, %c0_41] : memref<1x1x32x32xf32, #tpu.memory_space<vmem>>, vector<1x1x32x32xf32>
    %36 = vector.shape_cast %35 : vector<1x1x32x32xf32> to vector<32x32xf32>
    %37 = vector.shape_cast %34 : vector<32x32xf32> to vector<1x1x32x32xf32>
    tpu.vector_store %arg6[%c0_38, %c0_39, %c0_40, %c0_41], %37 {strides = array<i32>} : memref<1x1x32x32xf32, #tpu.memory_space<vmem>>, vector<1x1x32x32xf32>,
    return
  }
  func.func @transform_0(%arg0: i32, %arg1: i32, %arg2: i32) -> (i32, i32, i32, i32) {
    %c0_i32 = arith.constant 0 : i32
    %c0_i32_0 = arith.constant 0 : i32
    return %arg0, %arg1, %arg2, %c0_i32 : i32, i32, i32, i32
  }
  func.func @transform_1(%arg0: i32, %arg1: i32, %arg2: i32) -> (i32, i32, i32) {
    %c0_i32 = arith.constant 0 : i32
    %c0_i32_0 = arith.constant 0 : i32
    %c0_i32_1 = arith.constant 0 : i32
    %c0_i32_2 = arith.constant 0 : i32
    return %c0_i32, %c0_i32_0, %c0_i32_1 : i32, i32, i32
  }
  func.func @transform_2(%arg0: i32, %arg1: i32, %arg2: i32) -> (i32, i32, i32) {
    %c0_i32 = arith.constant 0 : i32
    %c0_i32_0 = arith.constant 0 : i32
    %c0_i32_1 = arith.constant 0 : i32
    %c0_i32_2 = arith.constant 0 : i32
    return %c0_i32, %c0_i32_0, %c0_i32_1 : i32, i32, i32
  }
  func.func @transform_3(%arg0: i32, %arg1: i32, %arg2: i32) -> (i32, i32, i32, i32) {
    %c0_i32 = arith.constant 0 : i32
    %c0_i32_0 = arith.constant 0 : i32
    return %arg0, %arg1, %arg2, %c0_i32 : i32, i32, i32, i32
  }
}

</mosaic_0001>

<bundles_post_ra>
// kernel: tpu_custom_call.1
= control target key start
LH: loop header
LB: loop body
LE: loop exit
PB: predicated region body
PF: predicated region fallthrough
CT: control target
= control target key end

     0   :  { %8 = vsyncpa [#allocation3], 0  ;;  %s5006_s0 = inlined_call_operand.hbm [shape: f32[2,4,16,16], index: 0, kind: input, shape index: {}]   ;;  %s5007_s1 = inlined_call_operand.vmem [shape: f32[2,16,32], index: 1, kind: input, shape index: {}]   ;;  %s5008_s2 = inlined_call_operand.vmem [shape: f32[2,32,16], index: 2, kind: input, shape index: {}]   ;;  %s5009_s3 = inlined_call_operand.hbm [shape: f32[2,1,32,32], index: 3, kind: output, shape index: {}]  }
   0x1   :  { %10 = vsyncpa [#allocation3 + $0x1], 0 }
   0x2   :  { %11 = vsyncpa [#allocation4], 0 }
   0x3   :  { %13 = vsyncpa [#allocation4 + $0x1], 0  ;;  %s4522_s12 = smov 0   ;;  %s4524_s13 = smov 0  }
   0x4   :  { %s4526_s14 = smov 0   ;;  %s4528_s15 = smov 0  }
   0x5   :  { %s4530_s16 = smov 0   ;;  %s4532_s17 = smov 0  }
   0x6 LB: > { %s3599_s18 = sadd.s32 4294967295, %s4494_s17   ;;  %s3600_s19 = sadd.s32 4294967294, %s4494_s17   ;;  %s4494_s17 = sphi %s4532_s17, %s19_s17   ;;  %s4490_s16 = sphi %s4530_s16, %s5024_s16   ;;  %s4486_s15 = sphi %s4528_s15, %s5023_s15   ;;  %s4482_s14 = sphi %s4526_s14, %s5022_s14   ;;  %s4478_s13 = sphi %s4524_s13, %s5021_s13   ;;  %s4474_s12 = sphi %s4522_s12, %s5020_s12  }
   0x7   : > { %s38_s20 = sadd.s32 1, %s4490_s16  ;;  %s49_s21 = sadd.s32 1, %s4482_s14 }
   0x8   : > { %p40_p0 = scmp.ge.s32.totalorder %s38_s20, 2  ;;  %p56_p1 = scmp.ne.s32.totalorder %s4482_s14, %s4478_s13 }
   0x9   : > { %p57_p2 = scmp.eq.s32.totalorder %s4494_s17, 0  ;;  %p62_p3 = scmp.ne.s32.totalorder %s4478_s13, %s4474_s12 }
   0xa   : > { %s5026_s20 = smov (%p40_p0, %s38_s20), 0  ;;  %p63_p5 = scmp.eq.s32.totalorder %s3599_s18, 0 }
   0xb   : > { %p4563_p4 = por %p57_p2, %p56_p1  ;;  %s42_s23 = ssub.s32 %s4490_s16, %s5026_s20 }
   0xc   : > { %p132_p6 = scmp.eq.s32.totalorder %s3599_s18, 1  ;;  %p47_p7 = scmp.eq.s32.totalorder %s42_s23, 0 }
   0xd   : > { %p4569_p8 = por %p63_p5, %p62_p3  ;;  %p138_p10 = scmp.eq.s32.totalorder %s3600_s19, 1 }
   0xe   : > { %p4573_p9 = por %p132_p6, %p56_p1  ;;  %p4328_p13 = scmp.lt.s32.totalorder %s4494_s17, 2 }
   0xf   : > { %s4578_s26 = scalar_select %p47_p7, %s4482_s14, %s49_s21  }
  0x10   : > { %s5013_s25 = scalar_select %p4573_p9, 1, 0 }
  0x11   : > { %p4580_p11 = por %p138_p10, %p62_p3  ;;  %s164_s28 = sand.u32 1, %s4482_s14  }
  0x12   : > { %s3603_s29 = sshll.u32 %s164_s28, 6  ;;  %s3626_s30 = sshll.u32 %s4490_s16, 10 }
  0x13   : > { %s5014_s27 = scalar_select %p4580_p11, 1, 0 }
  0x14   : > { %s4591_s6 = scalar_lea.hbm %s5006_s0, %s3626_s30  ;;  %s168_s7 = scalar_lea.vmem [#allocation2], %s3603_s29 }
  0x15   : > { %s180_s8 = sshll.u32 %s168_s7, 4  ;;  %p4597_p0 = pnand %p4328_p13, %p4563_p4  ;;  %s4593_s8 = int_to_ptr.vmem [resolvable:$true] %s180_s8 }
  0x16   : > { %s4602_s10 = scalar_lea.sflag [#allocation3], %s164_s28  ;;  %s4382_s11 = scalar_lea.hbm %s4591_s6, 1024 }
  0x17   : > { %p4383_p2 = scmp.ne.s32.totalorder %s4591_s6, %s4382_s11  ;;  %p4384_p3 = pneg %p4597_p0 }
  0x18   : > { %s4387_s21 = scalar_lea.hbm %s5006_s0, 2048  ;;  %p4388_p4 = scmp.lt.u32.totalorder %s4591_s6, %s5006_s0 }
  0x19   : > { %p4385_p5 = pnand %p4384_p3, %p4383_p2  ;;  %p4389_p7 = scmp.lt.u32.totalorder %s4387_s21, %s4382_s11 }
  0x1a   : > { %p4391_p13 = scmp.lt.u32.totalorder %s4382_s11, %s4591_s6 }
  0x1b   : > { %p4386_p6 = pneg %p4385_p5  ;;  %p4390_p10 = por %p4389_p7, %p4388_p4 }
  0x1d   : > { %p4392_p12 = por %p4391_p13, %p4390_p10 }
  0x1f   : > { %p4393_p1 = pnand %p4392_p12, %p4386_p6 }
  0x21   : > { %4396 = shalt.err (!%p4393_p1)
}
  0x22   : > { %s4397_s28 = scalar_lea.vmem %s4593_s8, 1024  ;;  %s4496_s29 = smov [#allocation2]  }
  0x23   : > { %p4398_p2 = scmp.ne.s32.totalorder %s4593_s8, %s4397_s28  ;;  %s4402_s30 = sshll.u32 %s4496_s29, 4  ;;  %s4403_s30 = int_to_ptr.vmem [resolvable:$false] %s4402_s30 }
  0x24   : > { %s4404_s4 = scalar_lea.vmem %s4403_s30, 2048  ;;  %p4405_p9 = scmp.lt.s32.totalorder %s4593_s8, %s4403_s30 }
  0x25   : > { %p4400_p5 = pnand %p4398_p2, %p4384_p3  ;;  %p4406_p4 = scmp.lt.s32.totalorder %s4404_s4, %s4397_s28 }
  0x27   : > { %p4401_p11 = pneg %p4400_p5  ;;  %p4407_p7 = por %p4406_p4, %p4405_p9 }
  0x29   : > { %p4408_p10 = pnand %p4407_p7, %p4401_p11 }
  0x2b   : > { %4411 = shalt.err (!%p4408_p10)
}
  0x2c   : > { %s4497_s5 = smov 128   ;;  %s4498_s7 = smov 8  }
  0x2d   : > { %4323 = dma.hbm_to_vmem [thread:$0]  (!%p4597_p0), %s4591_s6, 1024, %s4593_s8, %s4602_s10, %s4497_s5, %s4497_s5, %s4498_s7  }
  0x2e   : > { %p188_p12 = scmp.lt.s32.totalorder %s4494_s17, 3  ;;  %p5016_p1 = scmp.ge.s32.totalorder %s4494_s17, 1 }
  0x30   : > { %p189_p3 = pnand %p5016_p1, %p188_p12 }
  0x31   : > { %s4634_s11 = sand.u32 (!%p189_p3), 1, %s4478_s13  }
  0x32   : > { %192 = sbr.rel (%p189_p3) target bundleno = 656 (0x290), region = 32  ;;  %s3607_s18 = sshll.u32 (!%p189_p3), %s4634_s11, 6 }
  0x33   : > { %s195_s19 = scalar_lea.sflag (!%p189_p3), [#allocation3], %s4634_s11  ;;  %s4638_s21 = scalar_lea.vmem (!%p189_p3), [#allocation2], %s3607_s18 }
  0x39   : > { %4465 = dma.done.wait (%p4569_p8), %s195_s19, 1024  }
  0x3a   : > { %4467 = vsyncadd (%p4569_p8), %s195_s19, 4294966272  ;;  %vm234_vm0 = vcmask 130048   ;;  %v3611_v0 = vld [vmem:[%s5007_s1 + $0x10] sm:$0xff]  ;;  %v3612_v1 = vld [vmem:[%s5007_s1 + $0x18] sm:$0xff]  ;;  %s3608_s29 = sshll.u32 %s4634_s11, 5  ;;  %vm3482_vm1 = vcmask 261120  }
  0x3b   : > { %v3609_v2 = vld [vmem:[%s4638_s21 + $0x10] sm:$0xff]  ;;  %v242_v3 = vand.u32 4294901760, %v3611_v0  ;;  %v245_v4 = vand.u32 4294901760, %v3612_v1  ;;  %v3610_v7 = vld [vmem:[%s4638_s21 + $0x18] sm:$0xff]  ;;  %v226_v44 = vld [vmem:[%s5007_s1] sm:$0xff]  ;;  %s220_s30 = scalar_lea.vmem [#allocation5], %s3608_s29 }
  0x3c   : > { %v236_v5 = vsel %vm234_vm0, %v3609_v2, 0  ;;  %v3615_v6 = vld [vmem:[%s4638_s21 + $0x30] sm:$0xff]  ;;  %v3616_v8 = vld [vmem:[%s4638_s21 + $0x38] sm:$0xff]  ;;  %v239_v11 = vsel %vm234_vm0, %v3610_v7, 0  ;;  %v227_v45 = vld [vmem:[%s5007_s1 + $0x8] sm:$0xff]  ;;  %v750_v48 = vand.u32 4294901760, %v226_v44 }
  0x3d   : > { %v4655_v9 = vand.u32 4294901760, %v236_v5  ;;  %v1262_v10 = vsel %vm234_vm0, %v3615_v6, 0  ;;  %v1265_v12 = vsel %vm234_vm0, %v3616_v8, 0  ;;  %v4660_v13 = vpack.c.bf16 %v245_v4, %v242_v3  ;;  %v224_v46 = vld [vmem:[%s4638_s21] sm:$0xff]  ;;  %v225_v53 = vld [vmem:[%s4638_s21 + $0x8] sm:$0xff]  ;;  %s3505_s4 = sshll.u32 %s220_s30, 4  ;;  %s4949_s4 = int_to_ptr.vmem [resolvable:$true] %s3505_s4 }
  0x3e   : > { %v4662_v14 = vand.u32 4294901760, %v1262_v10  ;;  %v4664_v15 = vand.u32 4294901760, %v239_v11  ;;  %v4666_v16 = vand.u32 4294901760, %v1265_v12  ;;  %v330_v18 = vsub.f32 %v3611_v0, %v242_v3  ;;  %v3613_v47 = vld [vmem:[%s4638_s21 + $0x20] sm:$0xff]  ;;  %v3614_v55 = vld [vmem:[%s4638_s21 + $0x28] sm:$0xff]  ;;  %s3627_s5 = sshll.u32 %s4486_s15, 9 }
  0x3f   : > { %v309_v17 = vsub.f32 %v236_v5, %v4655_v9  ;;  %v337_v19 = vsub.f32 %v3612_v1, %v245_v4  ;;  %4085 = vmatprep.subr.bf16.mxu0 %v4660_v13  ;;  %4133 = vmatprep.subr.bf16.mxu1 %v4660_v13  ;;  %v753_v49 = vand.u32 4294901760, %v227_v45  ;;  %v744_v50 = vsel %vm234_vm0, %v224_v46, 0  ;;  %s4955_s19 = scalar_lea.hbm %s5009_s3, %s3627_s5  ;;  %s3488_s15 = scalar_lea.sflag [#allocation4], %s4634_s11 }
  0x40   : > { %v1335_v20 = vsub.f32 %v1262_v10, %v4662_v14  ;;  %v4673_v21 = vsub.f32 %v239_v11, %v4664_v15  ;;  %v4676_v22 = vsub.f32 %v1265_v12, %v4666_v16  ;;  %4087 = vmatpush3.bf16.msra.mxu0 %v4660_v13  ;;  %4135 = vmatpush3.bf16.msra.mxu1 %v4660_v13  ;;  %v331_v24 = vand.u32 4294901760, %v330_v18  ;;  %s4412_s21 = scalar_lea.vmem %s4949_s4, 512  ;;  %p5017_p9 = scmp.ne.s32.totalorder %s5013_s25, 0 }
  0x41   : > { %v310_v23 = vand.u32 4294901760, %v309_v17  ;;  %v338_v25 = vand.u32 4294901760, %v337_v19  ;;  %v4092_v42 = vpack.c.bf16 %v337_v19, %v330_v18  ;;  %v1770_v51 = vsel %vm234_vm0, %v3613_v47, 0  ;;  %v1254_v47 = vld [vmem:[%s5008_s2 + $0x18] sm:$0xff]  ;;  %p4413_p8 = scmp.ne.s32.totalorder %s4949_s4, %s4412_s21  ;;  %s4499_s6 = smov [#allocation5]  }
  0x42   : > { %v1336_v26 = vand.u32 4294901760, %v1335_v20  ;;  %v320_v27 = vand.u32 4294901760, %v4673_v21  ;;  %v1346_v28 = vand.u32 4294901760, %v4676_v22  ;;  %v332_v30 = vsub.f32 %v330_v18, %v331_v24  ;;  %s4416_s8 = sshll.u32 %s4499_s6, 4  ;;  %s4417_s8 = int_to_ptr.vmem [resolvable:$false] %s4416_s8 }
  0x43   : > { %v311_v29 = vsub.f32 %v309_v17, %v310_v23  ;;  %v339_v31 = vsub.f32 %v337_v19, %v338_v25  ;;  %v4100_v43 = vpack.c.bf16 %v338_v25, %v331_v24  ;;  %v4704_v52 = vand.u32 4294901760, %v744_v50  ;;  %v1251_v25 = vld [vmem:[%s5008_s2] sm:$0xff]  ;;  %p4414_p11 = pnand %p4413_p8, %p5017_p9  ;;  %s4418_s9 = scalar_lea.vmem %s4417_s8, 1024 }
  0x44   : > { %v1337_v32 = vsub.f32 %v1335_v20, %v1336_v26  ;;  %v321_v33 = vsub.f32 %v4673_v21, %v320_v27  ;;  %v1347_v34 = vsub.f32 %v4676_v22, %v1346_v28  ;;  %v333_v36 = vand.u32 4294901760, %v332_v30  ;;  %p4419_p6 = scmp.lt.s32.totalorder %s4949_s4, %s4417_s8  ;;  %p4420_p13 = scmp.lt.s32.totalorder %s4418_s9, %s4412_s21 }
  0x45   : > { %v312_v35 = vand.u32 4294901760, %v311_v29  ;;  %v340_v37 = vand.u32 4294901760, %v339_v31  ;;  %v4707_v54 = vand.u32 4294901760, %v1770_v51  ;;  %v4710_v56 = vsub.f32 %v226_v44, %v750_v48  ;;  %v3619_v44 = vld [vmem:[%s5008_s2 + $0x30] sm:$0xff]  ;;  %p4415_p0 = pneg %p4414_p11 }
  0x46   : > { %v1338_v38 = vand.u32 4294901760, %v1337_v32  ;;  %v322_v39 = vand.u32 4294901760, %v321_v33  ;;  %v1348_v40 = vand.u32 4294901760, %v1347_v34  ;;  %v4712_v57 = vsub.f32 %v227_v45, %v753_v49  ;;  %p4421_p2 = por %p4420_p13, %p4419_p6 }
  0x47   : > { %3800 = vmatprep.mubr.f32.mxu0 %v312_v35  ;;  %v4088_v41 = vpack.c.bf16 %v340_v37, %v333_v36  ;;  %v747_v58 = vsel %vm234_vm0, %v225_v53, 0  ;;  %v4717_v59 = vsub.f32 %v744_v50, %v4704_v52  ;;  %v1773_v60 = vsel %vm234_vm0, %v3614_v55, 0  ;;  %v3620_v50 = vld [vmem:[%s5008_s2 + $0x38] sm:$0xff] }
  0x48   : > { %3884 = vmatprep.mubr.f32.mxu1 %v1338_v38  ;;  %3801 = vmatmul.mubr.f32.vlgmr.msra.gmra.mrb[0].mxu0 %v322_v39  ;;  %v4723_v61 = vsub.f32 %v1770_v51, %v4707_v54  ;;  %v839_v62 = vand.u32 4294901760, %v4710_v56  ;;  %v846_v63 = vand.u32 4294901760, %v4712_v57  ;;  %v4728_v0 = vand.u32 4294901760, %v747_v58  ;;  %v3618_v38 = vld [vmem:[%s5008_s2 + $0x28] sm:$0xff]  ;;  %p4422_p5 = pnand %p4421_p2, %p4415_p0 }
  0x49   : > { %3885 = vmatmul.mubr.f32.vlgmr.msra.gmra.mrb[0].mxu1 %v1348_v40  ;;  %4089 = vmatprep.subr.bf16.mxu0 %v4088_v41  ;;  %v4730_v1 = vand.u32 4294901760, %v1773_v60  ;;  %v818_v2 = vand.u32 4294901760, %v4717_v59  ;;  %v4733_v3 = vpack.c.bf16 %v753_v49, %v750_v48  ;;  %v4116_v24 = vpack.c.bf16 %v4712_v57, %v4710_v56  ;;  %v1252_v39 = vld [vmem:[%s5008_s2 + $0x8] sm:$0xff] }
  0x4a   : > { %4137 = vmatprep.subr.bf16.mxu1 %v4088_v41  ;;  %4091 = vmatpush3.bf16.msra.mxu0 %v4088_v41  ;;  %v1844_v4 = vand.u32 4294901760, %v4723_v61  ;;  %v840_v5 = vsub.f32 %v4710_v56, %v839_v62  ;;  %v847_v6 = vsub.f32 %v4712_v57, %v846_v63  ;;  %v827_v7 = vsub.f32 %v747_v58, %v4728_v0 }
  0x4b   : > { %4139 = vmatpush3.bf16.msra.mxu1 %v4088_v41  ;;  %3807 = vmatprep.mubr.f32.mxu0 %v4655_v9  ;;  %v1853_v8 = vsub.f32 %v1773_v60, %v4730_v1  ;;  %v819_v10 = vsub.f32 %v4717_v59, %v818_v2  ;;  %v2286_v40 = vsel %vm234_vm0, %v3618_v38, 0  ;;  %v1253_v41 = vld [vmem:[%s5008_s2 + $0x10] sm:$0xff]  ;;  %v2289_v48 = vsel %vm234_vm0, %v3619_v44, 0 }
  0x4c   : > { %3891 = vmatprep.mubr.f32.mxu1 %v4662_v14  ;;  %4093 = vmatprep.subr.bf16.mxu0 %v4092_v42  ;;  %v1845_v11 = vsub.f32 %v4723_v61, %v1844_v4  ;;  %v841_v12 = vand.u32 4294901760, %v840_v5  ;;  %v828_v18 = vand.u32 4294901760, %v827_v7  ;;  %v2889_v45 = vsel %vm234_vm0, %v1253_v41, 0 }
  0x4d   : > { %4141 = vmatprep.subr.bf16.mxu1 %v4092_v42  ;;  %v1854_v19 = vand.u32 4294901760, %v1853_v8  ;;  %v4827_v49 = vand.u32 4294901760, %v2889_v45  ;;  %v2892_v53 = vsel %vm234_vm0, %v1254_v47, 0  ;;  %v2292_v55 = vsel %vm234_vm0, %v3620_v50, 0 }
  0x4e   : > { %v4846_v58 = vand.u32 4294901760, %v2892_v53  ;;  %v4849_v60 = vand.u32 4294901760, %v2292_v55 }
  0x4f   : > { %v4843_v56 = vsub.f32 %v2889_v45, %v4827_v49 }
  0x50   : > { %3808 = vmatmul.mubr.f32.vlgmr.msra.gmra.mrb[0].mxu0 %v4664_v15 }
  0x51   : > { %3892 = vmatmul.mubr.f32.vlgmr.msra.gmra.mrb[0].mxu1 %v4666_v16  ;;  %4095 = vmatpush3.bf16.msra.mxu0 %v4092_v42 }
  0x52   : > { %4143 = vmatpush3.bf16.msra.mxu1 %v4092_v42  ;;  %3814 = vmatprep.mubr.f32.mxu0 %v309_v17  ;;  %v848_v17 = vand.u32 4294901760, %v847_v6  ;;  %v2886_v42 = vsel %vm234_vm0, %v1252_v39, 0 }
  0x53   : > { %3898 = vmatprep.mubr.f32.mxu1 %v1335_v20  ;;  %4097 = vmatprep.subr.bf16.mxu0 %v4660_v13  ;;  %v820_v20 = vand.u32 4294901760, %v819_v10  ;;  %v4821_v46 = vand.u32 4294901760, %v2886_v42 }
  0x54   : > { %4145 = vmatprep.subr.bf16.mxu1 %v4660_v13 }
  0x58   : > { %3815 = vmatmul.mubr.f32.vlgmr.msra.gmra.mrb[0].mxu0 %v4673_v21  ;;  %v1846_v21 = vand.u32 4294901760, %v1845_v11 }
  0x59   : > { %3899 = vmatmul.mubr.f32.vlgmr.msra.gmra.mrb[0].mxu1 %v4676_v22  ;;  %4099 = vmatpush3.bf16.msra.mxu0 %v4660_v13  ;;  %v4112_v22 = vpack.c.bf16 %v848_v17, %v841_v12 }
  0x5a   : > { %4147 = vmatpush3.bf16.msra.mxu1 %v4660_v13  ;;  %3821 = vmatprep.mubr.f32.mxu0 %v310_v23 }
  0x5b   : > { %3905 = vmatprep.mubr.f32.mxu1 %v1336_v26  ;;  %4101 = vmatprep.subr.bf16.mxu0 %v4100_v43 }
  0x5c   : > { %4149 = vmatprep.subr.bf16.mxu1 %v4100_v43 }
  0x60   : > { %3822 = vmatmul.mubr.f32.vlgmr.msra.gmra.mrb[0].mxu0 %v320_v27  ;;  %v2883_v27 = vsel %vm234_vm0, %v1251_v25, 0 }
  0x61   : > { %3906 = vmatmul.mubr.f32.vlgmr.msra.gmra.mrb[0].mxu1 %v1346_v28  ;;  %4103 = vmatpush3.bf16.msra.mxu0 %v4100_v43  ;;  %v4788_v29 = vand.u32 4294901760, %v2883_v27 }
  0x62   : > { %4151 = vmatpush3.bf16.msra.mxu1 %v4100_v43  ;;  %3828 = vmatprep.mubr.f32.mxu0 %v4655_v9  ;;  %v4815_v43 = vand.u32 4294901760, %v2286_v40 }
  0x63   : > { %3912 = vmatprep.mubr.f32.mxu1 %v4662_v14  ;;  %4105 = vmatprep.subr.bf16.mxu0 %v4660_v13  ;;  %v4794_v31 = vsub.f32 %v2883_v27, %v4788_v29 }
  0x64   : > { %4153 = vmatprep.subr.bf16.mxu1 %v4660_v13  ;;  %v4833_v51 = vsub.f32 %v2286_v40, %v4815_v43 }
  0x65   : > { %v2963_v33 = vand.u32 4294901760, %v4794_v31 }
  0x66   : > { %v2373_v57 = vand.u32 4294901760, %v4833_v51 }
  0x67   : > { %v2964_v35 = vsub.f32 %v4794_v31, %v2963_v33 }
  0x68   : > { %3829 = vmatmul.mubr.f32.vlgmr.msra.gmra.mrb[0].mxu0 %v4664_v15 }
  0x69   : > { %3913 = vmatmul.mubr.f32.vlgmr.msra.gmra.mrb[0].mxu1 %v4666_v16  ;;  %4107 = vmatpush3.bf16.msra.mxu0 %v4660_v13  ;;  %v2965_v37 = vand.u32 4294901760, %v2964_v35 }
  0x6a   : > { %4155 = vmatpush3.bf16.msra.mxu1 %v4660_v13  ;;  %3835 = vmatprep.mubr.f32.mxu0 %v4655_v9  ;;  %v829_v9 = vsub.f32 %v827_v7, %v828_v18  ;;  %v1855_v13 = vsub.f32 %v1853_v8, %v1854_v19 }
  0x6b   : > { %3919 = vmatprep.mubr.f32.mxu1 %v4662_v14  ;;  %4109 = vmatprep.subr.bf16.mxu0 %v4733_v3 }
  0x6c   : > { %4157 = vmatprep.subr.bf16.mxu1 %v4733_v3  ;;  %v830_v14 = vand.u32 4294901760, %v829_v9  ;;  %v1856_v23 = vand.u32 4294901760, %v1855_v13 }
  0x70   : > { %3836 = vmatmul.mubr.f32.vlgmr.msra.gmra.mrb[0].mxu0 %v4664_v15  ;;  %v4124_v15 = vpack.c.bf16 %v846_v63, %v839_v62  ;;  %v2983_v62 = vand.u32 4294901760, %v4843_v56  ;;  %v2374_v63 = vsub.f32 %v4833_v51, %v2373_v57 }
  0x71   : > { %3920 = vmatmul.mubr.f32.vlgmr.msra.gmra.mrb[0].mxu1 %v4666_v16  ;;  %4111 = vmatpush3.bf16.msra.mxu0 %v4733_v3  ;;  %v3617_v16 = vld [vmem:[%s5008_s2 + $0x20] sm:$0xff] }
  0x72   : > { %4159 = vmatpush3.bf16.msra.mxu1 %v4733_v3  ;;  %3842 = vmatprep.mubr.f32.mxu0 %v820_v20  ;;  %v2283_v26 = vsel %vm234_vm0, %v3617_v16, 0  ;;  %v2375_v17 = vand.u32 4294901760, %v2374_v63 }
  0x73   : > { %3926 = vmatprep.mubr.f32.mxu1 %v1846_v21  ;;  %4113 = vmatprep.subr.bf16.mxu0 %v4112_v22  ;;  %v4786_v28 = vand.u32 4294901760, %v2283_v26 }
  0x74   : > { %4161 = vmatprep.subr.bf16.mxu1 %v4112_v22 }
  0x75   : > { %v4791_v30 = vsub.f32 %v2283_v26, %v4786_v28 }
  0x77   : > { %v2363_v32 = vand.u32 4294901760, %v4791_v30 }
  0x78   : > { %3843 = vmatmul.mubr.f32.vlgmr.msra.gmra.mrb[0].mxu0 %v830_v14 }
  0x79   : > { %3927 = vmatmul.mubr.f32.vlgmr.msra.gmra.mrb[0].mxu1 %v1856_v23  ;;  %4115 = vmatpush3.bf16.msra.mxu0 %v4112_v22  ;;  %v2364_v34 = vsub.f32 %v4791_v30, %v2363_v32 }
  0x7a   : > { %4163 = vmatpush3.bf16.msra.mxu1 %v4112_v22  ;;  %3849 = vmatprep.mubr.f32.mxu0 %v4704_v52 }
  0x7b   : > { %3933 = vmatprep.mubr.f32.mxu1 %v4707_v54  ;;  %4117 = vmatprep.subr.bf16.mxu0 %v4116_v24  ;;  %v2365_v36 = vand.u32 4294901760, %v2364_v34 }
  0x7c   : > { %4165 = vmatprep.subr.bf16.mxu1 %v4116_v24 }
  0x80   : > { %3850 = vmatmul.mubr.f32.vlgmr.msra.gmra.mrb[0].mxu0 %v4728_v0 }
  0x81   : > { %3934 = vmatmul.mubr.f32.vlgmr.msra.gmra.mrb[0].mxu1 %v4730_v1  ;;  %4119 = vmatpush3.bf16.msra.mxu0 %v4116_v24 }
  0x82   : > { %4167 = vmatpush3.bf16.msra.mxu1 %v4116_v24  ;;  %3856 = vmatprep.mubr.f32.mxu0 %v4717_v59 }
  0x83   : > { %3940 = vmatprep.mubr.f32.mxu1 %v4723_v61  ;;  %4121 = vmatprep.subr.bf16.mxu0 %v4733_v3 }
  0x84   : > { %4169 = vmatprep.subr.bf16.mxu1 %v4733_v3 }
  0x88   : > { %3857 = vmatmul.mubr.f32.vlgmr.msra.gmra.mrb[0].mxu0 %v827_v7 }
  0x89   : > { %3941 = vmatmul.mubr.f32.vlgmr.msra.gmra.mrb[0].mxu1 %v1853_v8  ;;  %4123 = vmatpush3.bf16.msra.mxu0 %v4733_v3  ;;  %v2984_v8 = vsub.f32 %v4843_v56, %v2983_v62 }
  0x8a   : > { %4171 = vmatpush3.bf16.msra.mxu1 %v4733_v3  ;;  %3863 = vmatprep.mubr.f32.mxu0 %v818_v2  ;;  %v4865_v2 = vsub.f32 %v2292_v55, %v4849_v60 }
  0x8b   : > { %3947 = vmatprep.mubr.f32.mxu1 %v1844_v4  ;;  %4125 = vmatprep.subr.bf16.mxu0 %v4124_v15  ;;  %v2985_v25 = vand.u32 4294901760, %v2984_v8 }
  0x8c   : > { %4173 = vmatprep.subr.bf16.mxu1 %v4124_v15  ;;  %v2393_v22 = vand.u32 4294901760, %v4865_v2 }
  0x8e   : > { %v2394_v38 = vsub.f32 %v4865_v2, %v2393_v22 }
  0x90   : > { %3864 = vmatmul.mubr.f32.vlgmr.msra.gmra.mrb[0].mxu0 %v828_v18  ;;  %v2395_v63 = vand.u32 4294901760, %v2394_v38 }
  0x91   : > { %3948 = vmatmul.mubr.f32.vlgmr.msra.gmra.mrb[0].mxu1 %v1854_v19  ;;  %4127 = vmatpush3.bf16.msra.mxu0 %v4124_v15 }
  0x92   : > { %4175 = vmatpush3.bf16.msra.mxu1 %v4124_v15  ;;  %3870 = vmatprep.mubr.f32.mxu0 %v4704_v52 }
  0x93   : > { %3954 = vmatprep.mubr.f32.mxu1 %v4707_v54  ;;  %4129 = vmatprep.subr.bf16.mxu0 %v4733_v3 }
  0x94   : > { %4177 = vmatprep.subr.bf16.mxu1 %v4733_v3 }
  0x98   : > { %3871 = vmatmul.mubr.f32.vlgmr.msra.gmra.mrb[0].mxu0 %v4728_v0 }
  0x99   : > { %3955 = vmatmul.mubr.f32.vlgmr.msra.gmra.mrb[0].mxu1 %v4730_v1  ;;  %4131 = vmatpush3.bf16.msra.mxu0 %v4733_v3 }
  0x9a   : > { %4179 = vmatpush3.bf16.msra.mxu1 %v4733_v3  ;;  %3877 = vmatprep.mubr.f32.mxu0 %v4704_v52  ;;  %v4836_v52 = vsub.f32 %v2886_v42, %v4821_v46 }
  0x9b   : > { %3961 = vmatprep.mubr.f32.mxu1 %v4707_v54  ;;  %v4839_v54 = vand.u32 4294901760, %v2289_v48 }
  0x9c   : > { %v2973_v59 = vand.u32 4294901760, %v4836_v52 }
  0x9d   : > { %v4852_v61 = vsub.f32 %v2289_v48, %v4839_v54 }
  0x9f   : > { %v2383_v4 = vand.u32 4294901760, %v4852_v61 }
  0xa0   : > { %3878 = vmatmul.mubr.f32.vlgmr.msra.gmra.mrb[0].mxu0 %v4728_v0  ;;  %v4859_v0 = vsub.f32 %v2892_v53, %v4846_v58 }
  0xa1   : > { %3962 = vmatmul.mubr.f32.vlgmr.msra.gmra.mrb[0].mxu1 %v4730_v1  ;;  %4028 = vmatprep.mubr.f32.mxu0 %v2965_v37  ;;  %v2974_v1 = vsub.f32 %v4836_v52, %v2973_v59  ;;  %v2384_v23 = vsub.f32 %v4852_v61, %v2383_v4 }
  0xa2   : > { %3968 = vmatprep.mubr.f32.mxu1 %v2365_v36  ;;  %v2993_v18 = vand.u32 4294901760, %v4859_v0 }
  0xa3   : > { %v2975_v21 = vand.u32 4294901760, %v2974_v1  ;;  %v2385_v42 = vand.u32 4294901760, %v2384_v23 }
  0xa4   : > { %v2994_v34 = vsub.f32 %v4859_v0, %v2993_v18 }
  0xa6   : > { %v2995_v53 = vand.u32 4294901760, %v2994_v34 }
 0x173   : > { %v3879_v3 = vpop.f32.mrb[0].mxu0 }
 0x174   : > { %v2898_v5 = vand.u32 4294901760, %v3879_v3  ;;  %v3963_v6 = vpop.f32.mrb[0].mxu1  ;;  %v1241_v7 = vpop.f32.mrb[1].mxu0 }
 0x175   : > { %v2298_v10 = vand.u32 4294901760, %v3963_v6  ;;  %v2895_v11 = vand.u32 4294901760, %v1241_v7  ;;  %v2267_v12 = vpop.f32.mrb[1].mxu1 }
 0x176   : > { %v3010_v19 = vsub.f32 %v3879_v3, %v2898_v5  ;;  %v2295_v20 = vand.u32 4294901760, %v2267_v12 }
 0x177   : > { %v2410_v9 = vsub.f32 %v3963_v6, %v2298_v10  ;;  %v4873_v13 = vpack.c.bf16 %v2898_v5, %v2895_v11  ;;  %v3003_v14 = vsub.f32 %v1241_v7, %v2895_v11 }
 0x178   : > { %v3011_v24 = vand.u32 4294901760, %v3010_v19  ;;  %v4878_v15 = vpack.c.bf16 %v2298_v10, %v2295_v20  ;;  %v2403_v16 = vsub.f32 %v2267_v12, %v2295_v20 }
 0x179   : > { %v2411_v26 = vand.u32 4294901760, %v2410_v9  ;;  %v3004_v27 = vand.u32 4294901760, %v3003_v14  ;;  %4205 = vmatprep.subr.bf16.mxu0 %v4873_v13  ;;  %v4212_v35 = vpack.c.bf16 %v3010_v19, %v3003_v14 }
 0x17a   : > { %v3012_v36 = vsub.f32 %v3010_v19, %v3011_v24  ;;  %v2404_v37 = vand.u32 4294901760, %v2403_v16  ;;  %4181 = vmatprep.subr.bf16.mxu1 %v4878_v15  ;;  %4207 = vmatpush3.bf16.msra.mxu0 %v4873_v13  ;;  %v4188_v39 = vpack.c.bf16 %v2410_v9, %v2403_v16 }
 0x17b   : > { %v2412_v40 = vsub.f32 %v2410_v9, %v2411_v26  ;;  %v3005_v41 = vsub.f32 %v3003_v14, %v3004_v27  ;;  %4183 = vmatpush3.bf16.msra.mxu1 %v4878_v15  ;;  %v4220_v44 = vpack.c.bf16 %v3011_v24, %v3004_v27 }
 0x17c   : > { %v2405_v45 = vsub.f32 %v2403_v16, %v2404_v37  ;;  %v3013_v47 = vand.u32 4294901760, %v3012_v36  ;;  %v4196_v48 = vpack.c.bf16 %v2411_v26, %v2404_v37 }
 0x17d   : > { %4029 = vmatmul.mubr.f32.vlgmr.msra.gmra.mrb[2].mxu0 %v2975_v21  ;;  %v2413_v50 = vand.u32 4294901760, %v2412_v40  ;;  %v3006_v55 = vand.u32 4294901760, %v3005_v41 }
 0x17e   : > { %3969 = vmatmul.mubr.f32.vlgmr.msra.gmra.mrb[2].mxu1 %v2375_v17  ;;  %4031 = vmatprep.mubr.f32.mxu0 %v2985_v25  ;;  %v2406_v1 = vand.u32 4294901760, %v2405_v45 }
 0x17f   : > { %3971 = vmatprep.mubr.f32.mxu1 %v2385_v42  ;;  %v4208_v3 = vpack.c.bf16 %v3013_v47, %v3006_v55 }
 0x180   : > { %v4184_v5 = vpack.c.bf16 %v2413_v50, %v2406_v1 }
 0x181   : > { %4032 = vmatmul.mubr.f32.gmra.mrb[4].mxu0 %v2995_v53  ;;  %4209 = vmatprep.subr.bf16.mxu0 %v4208_v3 }
 0x182   : > { %3972 = vmatmul.mubr.f32.gmra.mrb[4].mxu1 %v2395_v63  ;;  %4185 = vmatprep.subr.bf16.mxu1 %v4184_v5 }
 0x183   : > { %4187 = vmatpush3.bf16.msra.mxu1 %v4184_v5  ;;  %4211 = vmatpush3.bf16.msra.mxu0 %v4208_v3 }
 0x184   : > { %4189 = vmatprep.subr.bf16.mxu1 %v4188_v39  ;;  %4213 = vmatprep.subr.bf16.mxu0 %v4212_v35 }
 0x185   : > { %3978 = vmatprep.mubr.f32.mxu1 %v4786_v28  ;;  %4038 = vmatprep.mubr.f32.mxu0 %v4788_v29 }
 0x186   : > { %3979 = vmatmul.mubr.f32.vlgmr.msra.gmra.mrb[2].mxu1 %v4815_v43  ;;  %4039 = vmatmul.mubr.f32.vlgmr.msra.gmra.mrb[2].mxu0 %v4821_v46 }
 0x187   : > { %4191 = vmatpush3.bf16.msra.mxu1 %v4188_v39  ;;  %4215 = vmatpush3.bf16.msra.mxu0 %v4212_v35 }
 0x188   : > { %4193 = vmatprep.subr.bf16.mxu1 %v4878_v15  ;;  %4217 = vmatprep.subr.bf16.mxu0 %v4873_v13 }
 0x189   : > { %3981 = vmatprep.mubr.f32.mxu1 %v4839_v54  ;;  %4041 = vmatprep.mubr.f32.mxu0 %v4827_v49 }
 0x18a   : > { %3982 = vmatmul.mubr.f32.gmra.mrb[4].mxu1 %v4849_v60  ;;  %4042 = vmatmul.mubr.f32.gmra.mrb[4].mxu0 %v4846_v58 }
 0x18b   : > { %3988 = vmatprep.mubr.f32.mxu1 %v4791_v30  ;;  %4048 = vmatprep.mubr.f32.mxu0 %v4794_v31 }
 0x18e   : > { %3989 = vmatmul.mubr.f32.vlgmr.msra.gmra.mrb[2].mxu1 %v4833_v51  ;;  %4049 = vmatmul.mubr.f32.vlgmr.msra.gmra.mrb[2].mxu0 %v4836_v52 }
 0x18f   : > { %4195 = vmatpush3.bf16.msra.mxu1 %v4878_v15  ;;  %4219 = vmatpush3.bf16.msra.mxu0 %v4873_v13 }
 0x190   : > { %4197 = vmatprep.subr.bf16.mxu1 %v4196_v48  ;;  %4221 = vmatprep.subr.bf16.mxu0 %v4220_v44 }
 0x191   : > { %3991 = vmatprep.mubr.f32.mxu1 %v4852_v61  ;;  %4051 = vmatprep.mubr.f32.mxu0 %v4843_v56 }
 0x192   : > { %3992 = vmatmul.mubr.f32.gmra.mrb[4].mxu1 %v4865_v2  ;;  %4052 = vmatmul.mubr.f32.gmra.mrb[4].mxu0 %v4859_v0 }
 0x193   : > { %3998 = vmatprep.mubr.f32.mxu1 %v2363_v32  ;;  %4058 = vmatprep.mubr.f32.mxu0 %v2963_v33 }
 0x196   : > { %3999 = vmatmul.mubr.f32.vlgmr.msra.gmra.mrb[2].mxu1 %v2373_v57  ;;  %4059 = vmatmul.mubr.f32.vlgmr.msra.gmra.mrb[2].mxu0 %v2973_v59 }
 0x197   : > { %4199 = vmatpush3.bf16.msra.mxu1 %v4196_v48  ;;  %4223 = vmatpush3.bf16.msra.mxu0 %v4220_v44 }
 0x198   : > { %4201 = vmatprep.subr.bf16.mxu1 %v4878_v15  ;;  %4225 = vmatprep.subr.bf16.mxu0 %v4873_v13 }
 0x199   : > { %4001 = vmatprep.mubr.f32.mxu1 %v2383_v4  ;;  %4061 = vmatprep.mubr.f32.mxu0 %v2983_v62 }
 0x19a   : > { %4002 = vmatmul.mubr.f32.gmra.mrb[4].mxu1 %v2393_v22  ;;  %4062 = vmatmul.mubr.f32.gmra.mrb[4].mxu0 %v2993_v18 }
 0x19b   : > { %4008 = vmatprep.mubr.f32.mxu1 %v4786_v28  ;;  %4068 = vmatprep.mubr.f32.mxu0 %v4788_v29 }
 0x19e   : > { %4009 = vmatmul.mubr.f32.vlgmr.msra.gmra.mrb[2].mxu1 %v4815_v43  ;;  %4069 = vmatmul.mubr.f32.vlgmr.msra.gmra.mrb[2].mxu0 %v4821_v46 }
 0x19f   : > { %4203 = vmatpush3.bf16.msra.mxu1 %v4878_v15  ;;  %4227 = vmatpush3.bf16.msra.mxu0 %v4873_v13 }
 0x1a0   : > { %4011 = vmatprep.mubr.f32.mxu1 %v4839_v54  ;;  %4071 = vmatprep.mubr.f32.mxu0 %v4827_v49 }
 0x1a2   : > { %4012 = vmatmul.mubr.f32.gmra.mrb[4].mxu1 %v4849_v60  ;;  %4072 = vmatmul.mubr.f32.gmra.mrb[4].mxu0 %v4846_v58 }
 0x1a3   : > { %4018 = vmatprep.mubr.f32.mxu1 %v4786_v28  ;;  %4078 = vmatprep.mubr.f32.mxu0 %v4788_v29 }
 0x1a6   : > { %4019 = vmatmul.mubr.f32.vlgmr.msra.gmra.mrb[2].mxu1 %v4815_v43  ;;  %4079 = vmatmul.mubr.f32.vlgmr.msra.gmra.mrb[2].mxu0 %v4821_v46 }
 0x1a7   : > { %4021 = vmatprep.mubr.f32.mxu1 %v4839_v54  ;;  %4081 = vmatprep.mubr.f32.mxu0 %v4827_v49 }
 0x1aa   : > { %4022 = vmatmul.mubr.f32.gmra.mrb[4].mxu1 %v4849_v60  ;;  %4082 = vmatmul.mubr.f32.gmra.mrb[4].mxu0 %v4846_v58 }
 0x279   : > { %v4020_v30 = vpop.f32.mrb[2].mxu1  ;;  %v4080_v31 = vpop.f32.mrb[2].mxu0 }
 0x27a   : > { %v4228_v28 = vadd.f32 %v4080_v31, %v4020_v30  ;;  %v2860_v29 = vpop.f32.mrb[3].mxu1  ;;  %v3460_v32 = vpop.f32.mrb[3].mxu0 }
 0x27b   : > { %v4229_v33 = vadd.f32 %v3460_v32, %v2860_v29 }
 0x27c   : > { %3484 = vst.msk [vmem:[%s220_s30 + $0x8] sm:$0xff] %vm3482_vm1, %v4228_v28 }
 0x27d   : > { %3483 = vst.msk [vmem:[%s220_s30] sm:$0xff] %vm3482_vm1, %v4229_v33  ;;  %v4023_v43 = vpop.f32.mrb[4].mxu1  ;;  %v4083_v46 = vpop.f32.mrb[4].mxu0 }
 0x27e   : > { %v4230_v49 = vadd.f32 %v4083_v46, %v4023_v43  ;;  %v2872_v51 = vpop.f32.mrb[5].mxu1  ;;  %v3472_v52 = vpop.f32.mrb[5].mxu0 }
 0x27f   : > { %v4231_v54 = vadd.f32 %v3472_v52, %v2872_v51 }
 0x280   : > { %3486 = vst.msk [vmem:[%s220_s30 + $0x18] sm:$0xff] %vm3482_vm1, %v4230_v49 }
 0x281   : > { %3485 = vst.msk [vmem:[%s220_s30 + $0x10] sm:$0xff] %vm3482_vm1, %v4231_v54 }
 0x282   : > { %4425 = shalt.err (!%p4422_p5)
}
 0x283   : > { %s4426_s10 = scalar_lea.hbm %s4955_s19, 512  ;;  %s4430_s23 = scalar_lea.hbm %s5009_s3, 1024 }
 0x284   : > { %p4427_p4 = scmp.ne.s32.totalorder %s4955_s19, %s4426_s10  ;;  %p4431_p12 = scmp.lt.u32.totalorder %s4955_s19, %s5009_s3 }
 0x285   : > { %p4432_p1 = scmp.lt.u32.totalorder %s4430_s23, %s4426_s10  ;;  %p4434_p8 = scmp.lt.u32.totalorder %s4426_s10, %s4955_s19 }
 0x286   : > { %p4428_p7 = pnand %p4427_p4, %p5017_p9 }
 0x287   : > { %p4433_p3 = por %p4432_p1, %p4431_p12 }
 0x288   : > { %p4429_p10 = pneg %p4428_p7 }
 0x289   : > { %p4435_p11 = por %p4434_p8, %p4433_p3 }
 0x28b   : > { %p4436_p0 = pnand %p4435_p11, %p4429_p10 }
 0x28d   : > { %4439 = shalt.err (!%p4436_p0)
}
 0x28e   : > { %s4500_s30 = smov 128   ;;  %s4501_s5 = smov 8  }
 0x28f   : > { %4318 = dma.vmem_to_hbm [thread:$0]  (%p5017_p9), %s4949_s4, 512, %s4955_s19, %s3488_s15, %s4500_s30, %s4500_s30, %s4501_s5  }
 0x290 PF: > { %s3520_s7 = sand.u32 1, %s4474_s12   ;;  %p5018_p6 = scmp.ne.s32.totalorder %s5014_s27, 0 }
 0x291   : > { %p5019_p13 = scmp.ge.s32.totalorder %s4494_s17, 2  ;;  %s3521_s18 = scalar_lea.sflag [#allocation4], %s3520_s7 }
 0x293   : > { %p4325_p2 = pnand %p5019_p13, %p5018_p6 }
 0x295   : > { %4469 = dma.done.wait (!%p4325_p2), %s3521_s18, 512  }
 0x296   : > { %4471 = vsyncadd (!%p4325_p2), %s3521_s18, 4294966784  ;;  %s19_s17 = sadd.s32 1, %s4494_s17   ;;  %s5020_s12 = smov %s4478_s13 }
 0x297   : > { %p16_p5 = scmp.ge.s32.totalorder %s19_s17, 4   ;;  %s5021_s13 = smov %s4482_s14 }
 0x298   : > { %s5022_s14 = smov %s4578_s26  ;;  %s5023_s15 = smov %s4490_s16 }
 0x299   : > { %s5024_s16 = smov %s5026_s20  ;;  %18 = sbr.rel (!%p16_p5) target bundleno = 6 (0x6), region = 82 }
 0x2a0   :  { %3526 = vsyncpa [#allocation3], 1 }
 0x2a1   :  { %3528 = vsyncpa [#allocation3 + $0x1], 1 }
 0x2a2   :  { %3529 = vsyncpa [#allocation4], 1 }
 0x2a3   :  { %3531 = vsyncpa [#allocation4 + $0x1], 1 }

</bundles_post_ra>
